<compile_context>
chip_gen: v6e
topology: v6e:2x2x1
jax: 0.10.0
libtpu: 0.0.40
codegen_flags: <defaults>
</compile_context>

<pallas_src>
import functools

import jax
import jax.numpy as jnp
from jax.experimental import pallas as pl
from jax.experimental.pallas import tpu as pltpu

IN_FEATURES = 4
HIDDEN = 128
HIDDEN_CHUNK = 32  # sublane chunk; (HIDDEN_CHUNK, TB) f32 ~= 32 vregs at TB=1024


def _round_up(n, m):
    return ((n + m - 1) // m) * m


def mlp_kernel(xt_ref, w1_ref, b1_ref, w2_ref, b2_ref, o_ref):
    # xt_ref : (4, TB)    batch on lanes (lane-dense)
    # w1_ref : (128, 4)   torch layout (out_features, in_features)
    # b1_ref : (128, 1)
    # w2_ref : (128, 1)   torch W2 (1,128) reshaped to a column
    # b2_ref : (1, 1)     scalar in SMEM
    # o_ref  : (1, TB)    lane-dense output row
    x = xt_ref[...].astype(jnp.float32)                 # (4, TB)
    tb = x.shape[1]
    acc = jnp.zeros((1, tb), jnp.float32)

    # Process the hidden dim in sublane chunks to bound vreg pressure.
    for h0 in range(0, HIDDEN, HIDDEN_CHUNK):           # static, unrolled
        w1c = w1_ref[h0:h0 + HIDDEN_CHUNK, :].astype(jnp.float32)  # (C, 4)
        b1c = b1_ref[h0:h0 + HIDDEN_CHUNK, :].astype(jnp.float32)  # (C, 1)
        w2c = w2_ref[h0:h0 + HIDDEN_CHUNK, :].astype(jnp.float32)  # (C, 1)

        # Layer 1 chunk: h[j, b] = b1[j] + sum_k w1[j, k] * x[k, b]  (VPU FMAs)
        h = b1c                                                      # -> (C, TB)
        for k in range(IN_FEATURES):                                 # static, unrolled
            h = h + w1c[:, k:k + 1] * x[k:k + 1, :]
        h = jnp.maximum(h, 0.0)                                      # ReLU

        # Layer 2 partial: multiply by w2 chunk and reduce over sublanes;
        # the accumulator stays lane-dense (1, TB).
        acc = acc + jnp.sum(h * w2c, axis=0, keepdims=True)

    o_ref[...] = (acc + b2_ref[0, 0]).astype(o_ref.dtype)


@functools.partial(jax.jit, static_argnames=("tb",))
def mlp_forward(x, w1_t, b1, w2_t, b2, *, tb=1024):
    """x: (B, 4); w1_t: (128, 4); b1: (128,); w2_t: (1, 128); b2: (1,)."""
    B, in_f = x.shape
    hidden = w1_t.shape[0]

    # Batch tile: multiple of 128 lanes; pad B up to a multiple of the tile.
    tb = min(tb, _round_up(B, 128))
    assert tb % 128 == 0
    b_pad = _round_up(B, tb)
    grid = b_pad // tb

    # Transposed, zero-padded input: batch on the lane (last) axis.
    xt = jnp.zeros((in_f, b_pad), x.dtype).at[:, :B].set(x.T)
    b1_col = b1.reshape(hidden, 1)
    w2_col = w2_t.reshape(hidden, 1)
    b2_s = b2.reshape(1, 1)

    out = pl.pallas_call(
        mlp_kernel,
        out_shape=jax.ShapeDtypeStruct((1, b_pad), jnp.float32),
        grid_spec=pltpu.PrefetchScalarGridSpec(
            num_scalar_prefetch=0,
            grid=(grid,),
            in_specs=[
                pl.BlockSpec((in_f, tb), lambda i: (0, i)),         # x tile (lane-dense)
                pl.BlockSpec((hidden, in_f), lambda i: (0, 0)),     # w1 (constant block)
                pl.BlockSpec((hidden, 1), lambda i: (0, 0)),        # b1
                pl.BlockSpec((hidden, 1), lambda i: (0, 0)),        # w2
                pl.BlockSpec(memory_space=pltpu.MemorySpace.SMEM),  # b2 scalar
            ],
            out_specs=pl.BlockSpec((1, tb), lambda i: (0, i)),      # lane-dense output row
        ),
        compiler_params=pltpu.CompilerParams(
            dimension_semantics=("parallel",),  # megacore sharding on v7x
        ),
    )(xt, w1_t, b1_col, w2_col, b2_s)

    return out.reshape(b_pad)[:B].reshape(B, 1).astype(x.dtype)


def init_params(key):
    # nn.Linear default init: U(-1/sqrt(fan_in), 1/sqrt(fan_in)); torch layouts.
    k1, k2, k3, k4 = jax.random.split(key, 4)
    bound1 = 1.0 / jnp.sqrt(4.0)
    bound2 = 1.0 / jnp.sqrt(128.0)
    w1_t = jax.random.uniform(k1, (HIDDEN, IN_FEATURES), jnp.float32, -bound1, bound1)
    b1 = jax.random.uniform(k2, (HIDDEN,), jnp.float32, -bound1, bound1)
    w2_t = jax.random.uniform(k3, (1, HIDDEN), jnp.float32, -bound2, bound2)
    b2 = jax.random.uniform(k4, (1,), jnp.float32, -bound2, bound2)
    return w1_t, b1, w2_t, b2


def _reference(x, w1_t, b1, w2_t, b2):
    h = jnp.maximum(x @ w1_t.T + b1, 0.0)
    return h @ w2_t.T + b2


if __name__ == "__main__":
    key = jax.random.PRNGKey(0)
    kx1, kx2, kp = jax.random.split(key, 3)
    w1_t, b1, w2_t, b2 = init_params(kp)

    # Small batch (single tile, padded to 128 lanes)
    B1 = 8
    x1 = jax.random.normal(kx1, (B1, IN_FEATURES), jnp.float32)
    out1 = jax.block_until_ready(mlp_forward(x1, w1_t, b1, w2_t, b2))
    ref1 = _reference(x1, w1_t, b1, w2_t, b2)
    assert out1.shape == (B1, 1)
    assert jnp.allclose(out1, ref1, atol=1e-5, rtol=1e-5)

    # Non-divisible batch exercising multiple grid steps + tail padding
    B2 = 300
    x2 = jax.random.normal(kx2, (B2, IN_FEATURES), jnp.float32)
    out2 = jax.block_until_ready(mlp_forward(x2, w1_t, b1, w2_t, b2, tb=128))
    ref2 = _reference(x2, w1_t, b1, w2_t, b2)
    assert out2.shape == (B2, 1)
    assert jnp.allclose(out2, ref2, atol=1e-5, rtol=1e-5)

    print("KERNEL_OK")
</pallas_src>

<mosaic_0001>
module attributes {stable_mosaic.version = 11 : i64} {
  func.func @mlp_kernel(%arg0: i32, %arg1: memref<4x128xf32, #tpu.memory_space<vmem>>, %arg2: memref<128x4xf32, #tpu.memory_space<vmem>>, %arg3: memref<128x1xf32, #tpu.memory_space<vmem>>, %arg4: memref<128x1xf32, #tpu.memory_space<vmem>>, %arg5: memref<1x1xf32, #tpu.memory_space<smem>>, %arg6: memref<1x128xf32, #tpu.memory_space<vmem>>) attributes {dimension_semantics = [#tpu.dimension_semantics<parallel>], iteration_bounds = array<i64: 1>, scalar_prefetch = 0 : i64, scratch_operands = 0 : i64, tpu.core_type = #tpu.core_type<tc>, window_params = [{transform_indices = @transform_0, window_bounds = array<i64: 4, 128>}, {pipeline_mode = #tpu.pipeline_mode<synchronous>, transform_indices = @transform_1, window_bounds = array<i64: 128, 4>}, {pipeline_mode = #tpu.pipeline_mode<synchronous>, transform_indices = @transform_2, window_bounds = array<i64: 128, 1>}, {pipeline_mode = #tpu.pipeline_mode<synchronous>, transform_indices = @transform_3, window_bounds = array<i64: 128, 1>}, {transform_indices = @transform_4, window_bounds = array<i64: 1, 1>}, {transform_indices = @transform_5, window_bounds = array<i64: 1, 128>}]} {
    %c0 = arith.constant 0 : index
    %c0_0 = arith.constant 0 : index
    %0 = vector.load %arg1[%c0, %c0_0] : memref<4x128xf32, #tpu.memory_space<vmem>>, vector<4x128xf32>
    %cst = arith.constant 0.000000e+00 : f32
    %1 = vector.broadcast %cst : f32 to vector<1x128xf32>
    %c0_1 = arith.constant 0 : index
    %c0_2 = arith.constant 0 : index
    %2 = vector.load %arg2[%c0_1, %c0_2] : memref<128x4xf32, #tpu.memory_space<vmem>>, vector<32x4xf32>
    %c0_3 = arith.constant 0 : index
    %c0_4 = arith.constant 0 : index
    %3 = vector.load %arg3[%c0_3, %c0_4] : memref<128x1xf32, #tpu.memory_space<vmem>>, vector<32x1xf32>
    %c0_5 = arith.constant 0 : index
    %c0_6 = arith.constant 0 : index
    %4 = vector.load %arg4[%c0_5, %c0_6] : memref<128x1xf32, #tpu.memory_space<vmem>>, vector<32x1xf32>
    %5 = vector.extract_strided_slice %2 {offsets = [0, 0], sizes = [32, 1], strides = [1, 1]} : vector<32x4xf32> to vector<32x1xf32>
    %6 = vector.extract_strided_slice %0 {offsets = [0, 0], sizes = [1, 128], strides = [1, 1]} : vector<4x128xf32> to vector<1x128xf32>
    %7 = vector.broadcast %5 : vector<32x1xf32> to vector<32x128xf32>
    %8 = vector.broadcast %6 : vector<1x128xf32> to vector<32x128xf32>
    %9 = arith.mulf %7, %8 : vector<32x128xf32>
    %10 = vector.broadcast %3 : vector<32x1xf32> to vector<32x128xf32>
    %11 = arith.addf %10, %9 : vector<32x128xf32>
    %12 = vector.extract_strided_slice %2 {offsets = [0, 1], sizes = [32, 1], strides = [1, 1]} : vector<32x4xf32> to vector<32x1xf32>
    %13 = vector.extract_strided_slice %0 {offsets = [1, 0], sizes = [1, 128], strides = [1, 1]} : vector<4x128xf32> to vector<1x128xf32>
    %14 = vector.broadcast %12 : vector<32x1xf32> to vector<32x128xf32>
    %15 = vector.broadcast %13 : vector<1x128xf32> to vector<32x128xf32>
    %16 = arith.mulf %14, %15 : vector<32x128xf32>
    %17 = arith.addf %11, %16 : vector<32x128xf32>
    %18 = vector.extract_strided_slice %2 {offsets = [0, 2], sizes = [32, 1], strides = [1, 1]} : vector<32x4xf32> to vector<32x1xf32>
    %19 = vector.extract_strided_slice %0 {offsets = [2, 0], sizes = [1, 128], strides = [1, 1]} : vector<4x128xf32> to vector<1x128xf32>
    %20 = vector.broadcast %18 : vector<32x1xf32> to vector<32x128xf32>
    %21 = vector.broadcast %19 : vector<1x128xf32> to vector<32x128xf32>
    %22 = arith.mulf %20, %21 : vector<32x128xf32>
    %23 = arith.addf %17, %22 : vector<32x128xf32>
    %24 = vector.extract_strided_slice %2 {offsets = [0, 3], sizes = [32, 1], strides = [1, 1]} : vector<32x4xf32> to vector<32x1xf32>
    %25 = vector.extract_strided_slice %0 {offsets = [3, 0], sizes = [1, 128], strides = [1, 1]} : vector<4x128xf32> to vector<1x128xf32>
    %26 = vector.broadcast %24 : vector<32x1xf32> to vector<32x128xf32>
    %27 = vector.broadcast %25 : vector<1x128xf32> to vector<32x128xf32>
    %28 = arith.mulf %26, %27 : vector<32x128xf32>
    %29 = arith.addf %23, %28 : vector<32x128xf32>
    %cst_7 = arith.constant 0.000000e+00 : f32
    %30 = vector.broadcast %cst_7 : f32 to vector<32x128xf32>
    %31 = arith.maximumf %29, %30 : vector<32x128xf32>
    %32 = vector.broadcast %4 : vector<32x1xf32> to vector<32x128xf32>
    %33 = arith.mulf %31, %32 : vector<32x128xf32>
    %cst_8 = arith.constant dense<0.000000e+00> : vector<128xf32>
    %34 = vector.multi_reduction <add>, %33, %cst_8 [0] : vector<32x128xf32> to vector<128xf32>
    %35 = vector.shape_cast %34 : vector<128xf32> to vector<1x128xf32>
    %36 = arith.addf %1, %35 : vector<1x128xf32>
    %c32 = arith.constant 32 : index
    %c0_9 = arith.constant 0 : index
    %37 = vector.load %arg2[%c32, %c0_9] : memref<128x4xf32, #tpu.memory_space<vmem>>, vector<32x4xf32>
    %c32_10 = arith.constant 32 : index
    %c0_11 = arith.constant 0 : index
    %38 = vector.load %arg3[%c32_10, %c0_11] : memref<128x1xf32, #tpu.memory_space<vmem>>, vector<32x1xf32>
    %c32_12 = arith.constant 32 : index
    %c0_13 = arith.constant 0 : index
    %39 = vector.load %arg4[%c32_12, %c0_13] : memref<128x1xf32, #tpu.memory_space<vmem>>, vector<32x1xf32>
    %40 = vector.extract_strided_slice %37 {offsets = [0, 0], sizes = [32, 1], strides = [1, 1]} : vector<32x4xf32> to vector<32x1xf32>
    %41 = vector.extract_strided_slice %0 {offsets = [0, 0], sizes = [1, 128], strides = [1, 1]} : vector<4x128xf32> to vector<1x128xf32>
    %42 = vector.broadcast %40 : vector<32x1xf32> to vector<32x128xf32>
    %43 = vector.broadcast %41 : vector<1x128xf32> to vector<32x128xf32>
    %44 = arith.mulf %42, %43 : vector<32x128xf32>
    %45 = vector.broadcast %38 : vector<32x1xf32> to vector<32x128xf32>
    %46 = arith.addf %45, %44 : vector<32x128xf32>
    %47 = vector.extract_strided_slice %37 {offsets = [0, 1], sizes = [32, 1], strides = [1, 1]} : vector<32x4xf32> to vector<32x1xf32>
    %48 = vector.extract_strided_slice %0 {offsets = [1, 0], sizes = [1, 128], strides = [1, 1]} : vector<4x128xf32> to vector<1x128xf32>
    %49 = vector.broadcast %47 : vector<32x1xf32> to vector<32x128xf32>
    %50 = vector.broadcast %48 : vector<1x128xf32> to vector<32x128xf32>
    %51 = arith.mulf %49, %50 : vector<32x128xf32>
    %52 = arith.addf %46, %51 : vector<32x128xf32>
    %53 = vector.extract_strided_slice %37 {offsets = [0, 2], sizes = [32, 1], strides = [1, 1]} : vector<32x4xf32> to vector<32x1xf32>
    %54 = vector.extract_strided_slice %0 {offsets = [2, 0], sizes = [1, 128], strides = [1, 1]} : vector<4x128xf32> to vector<1x128xf32>
    %55 = vector.broadcast %53 : vector<32x1xf32> to vector<32x128xf32>
    %56 = vector.broadcast %54 : vector<1x128xf32> to vector<32x128xf32>
    %57 = arith.mulf %55, %56 : vector<32x128xf32>
    %58 = arith.addf %52, %57 : vector<32x128xf32>
    %59 = vector.extract_strided_slice %37 {offsets = [0, 3], sizes = [32, 1], strides = [1, 1]} : vector<32x4xf32> to vector<32x1xf32>
    %60 = vector.extract_strided_slice %0 {offsets = [3, 0], sizes = [1, 128], strides = [1, 1]} : vector<4x128xf32> to vector<1x128xf32>
    %61 = vector.broadcast %59 : vector<32x1xf32> to vector<32x128xf32>
    %62 = vector.broadcast %60 : vector<1x128xf32> to vector<32x128xf32>
    %63 = arith.mulf %61, %62 : vector<32x128xf32>
    %64 = arith.addf %58, %63 : vector<32x128xf32>
    %cst_14 = arith.constant 0.000000e+00 : f32
    %65 = vector.broadcast %cst_14 : f32 to vector<32x128xf32>
    %66 = arith.maximumf %64, %65 : vector<32x128xf32>
    %67 = vector.broadcast %39 : vector<32x1xf32> to vector<32x128xf32>
    %68 = arith.mulf %66, %67 : vector<32x128xf32>
    %cst_15 = arith.constant dense<0.000000e+00> : vector<128xf32>
    %69 = vector.multi_reduction <add>, %68, %cst_15 [0] : vector<32x128xf32> to vector<128xf32>
    %70 = vector.shape_cast %69 : vector<128xf32> to vector<1x128xf32>
    %71 = arith.addf %36, %70 : vector<1x128xf32>
    %c64 = arith.constant 64 : index
    %c0_16 = arith.constant 0 : index
    %72 = vector.load %arg2[%c64, %c0_16] : memref<128x4xf32, #tpu.memory_space<vmem>>, vector<32x4xf32>
    %c64_17 = arith.constant 64 : index
    %c0_18 = arith.constant 0 : index
    %73 = vector.load %arg3[%c64_17, %c0_18] : memref<128x1xf32, #tpu.memory_space<vmem>>, vector<32x1xf32>
    %c64_19 = arith.constant 64 : index
    %c0_20 = arith.constant 0 : index
    %74 = vector.load %arg4[%c64_19, %c0_20] : memref<128x1xf32, #tpu.memory_space<vmem>>, vector<32x1xf32>
    %75 = vector.extract_strided_slice %72 {offsets = [0, 0], sizes = [32, 1], strides = [1, 1]} : vector<32x4xf32> to vector<32x1xf32>
    %76 = vector.extract_strided_slice %0 {offsets = [0, 0], sizes = [1, 128], strides = [1, 1]} : vector<4x128xf32> to vector<1x128xf32>
    %77 = vector.broadcast %75 : vector<32x1xf32> to vector<32x128xf32>
    %78 = vector.broadcast %76 : vector<1x128xf32> to vector<32x128xf32>
    %79 = arith.mulf %77, %78 : vector<32x128xf32>
    %80 = vector.broadcast %73 : vector<32x1xf32> to vector<32x128xf32>
    %81 = arith.addf %80, %79 : vector<32x128xf32>
    %82 = vector.extract_strided_slice %72 {offsets = [0, 1], sizes = [32, 1], strides = [1, 1]} : vector<32x4xf32> to vector<32x1xf32>
    %83 = vector.extract_strided_slice %0 {offsets = [1, 0], sizes = [1, 128], strides = [1, 1]} : vector<4x128xf32> to vector<1x128xf32>
    %84 = vector.broadcast %82 : vector<32x1xf32> to vector<32x128xf32>
    %85 = vector.broadcast %83 : vector<1x128xf32> to vector<32x128xf32>
    %86 = arith.mulf %84, %85 : vector<32x128xf32>
    %87 = arith.addf %81, %86 : vector<32x128xf32>
    %88 = vector.extract_strided_slice %72 {offsets = [0, 2], sizes = [32, 1], strides = [1, 1]} : vector<32x4xf32> to vector<32x1xf32>
    %89 = vector.extract_strided_slice %0 {offsets = [2, 0], sizes = [1, 128], strides = [1, 1]} : vector<4x128xf32> to vector<1x128xf32>
    %90 = vector.broadcast %88 : vector<32x1xf32> to vector<32x128xf32>
    %91 = vector.broadcast %89 : vector<1x128xf32> to vector<32x128xf32>
    %92 = arith.mulf %90, %91 : vector<32x128xf32>
    %93 = arith.addf %87, %92 : vector<32x128xf32>
    %94 = vector.extract_strided_slice %72 {offsets = [0, 3], sizes = [32, 1], strides = [1, 1]} : vector<32x4xf32> to vector<32x1xf32>
    %95 = vector.extract_strided_slice %0 {offsets = [3, 0], sizes = [1, 128], strides = [1, 1]} : vector<4x128xf32> to vector<1x128xf32>
    %96 = vector.broadcast %94 : vector<32x1xf32> to vector<32x128xf32>
    %97 = vector.broadcast %95 : vector<1x128xf32> to vector<32x128xf32>
    %98 = arith.mulf %96, %97 : vector<32x128xf32>
    %99 = arith.addf %93, %98 : vector<32x128xf32>
    %cst_21 = arith.constant 0.000000e+00 : f32
    %100 = vector.broadcast %cst_21 : f32 to vector<32x128xf32>
    %101 = arith.maximumf %99, %100 : vector<32x128xf32>
    %102 = vector.broadcast %74 : vector<32x1xf32> to vector<32x128xf32>
    %103 = arith.mulf %101, %102 : vector<32x128xf32>
    %cst_22 = arith.constant dense<0.000000e+00> : vector<128xf32>
    %104 = vector.multi_reduction <add>, %103, %cst_22 [0] : vector<32x128xf32> to vector<128xf32>
    %105 = vector.shape_cast %104 : vector<128xf32> to vector<1x128xf32>
    %106 = arith.addf %71, %105 : vector<1x128xf32>
    %c96 = arith.constant 96 : index
    %c0_23 = arith.constant 0 : index
    %107 = vector.load %arg2[%c96, %c0_23] : memref<128x4xf32, #tpu.memory_space<vmem>>, vector<32x4xf32>
    %c96_24 = arith.constant 96 : index
    %c0_25 = arith.constant 0 : index
    %108 = vector.load %arg3[%c96_24, %c0_25] : memref<128x1xf32, #tpu.memory_space<vmem>>, vector<32x1xf32>
    %c96_26 = arith.constant 96 : index
    %c0_27 = arith.constant 0 : index
    %109 = vector.load %arg4[%c96_26, %c0_27] : memref<128x1xf32, #tpu.memory_space<vmem>>, vector<32x1xf32>
    %110 = vector.extract_strided_slice %107 {offsets = [0, 0], sizes = [32, 1], strides = [1, 1]} : vector<32x4xf32> to vector<32x1xf32>
    %111 = vector.extract_strided_slice %0 {offsets = [0, 0], sizes = [1, 128], strides = [1, 1]} : vector<4x128xf32> to vector<1x128xf32>
    %112 = vector.broadcast %110 : vector<32x1xf32> to vector<32x128xf32>
    %113 = vector.broadcast %111 : vector<1x128xf32> to vector<32x128xf32>
    %114 = arith.mulf %112, %113 : vector<32x128xf32>
    %115 = vector.broadcast %108 : vector<32x1xf32> to vector<32x128xf32>
    %116 = arith.addf %115, %114 : vector<32x128xf32>
    %117 = vector.extract_strided_slice %107 {offsets = [0, 1], sizes = [32, 1], strides = [1, 1]} : vector<32x4xf32> to vector<32x1xf32>
    %118 = vector.extract_strided_slice %0 {offsets = [1, 0], sizes = [1, 128], strides = [1, 1]} : vector<4x128xf32> to vector<1x128xf32>
    %119 = vector.broadcast %117 : vector<32x1xf32> to vector<32x128xf32>
    %120 = vector.broadcast %118 : vector<1x128xf32> to vector<32x128xf32>
    %121 = arith.mulf %119, %120 : vector<32x128xf32>
    %122 = arith.addf %116, %121 : vector<32x128xf32>
    %123 = vector.extract_strided_slice %107 {offsets = [0, 2], sizes = [32, 1], strides = [1, 1]} : vector<32x4xf32> to vector<32x1xf32>
    %124 = vector.extract_strided_slice %0 {offsets = [2, 0], sizes = [1, 128], strides = [1, 1]} : vector<4x128xf32> to vector<1x128xf32>
    %125 = vector.broadcast %123 : vector<32x1xf32> to vector<32x128xf32>
    %126 = vector.broadcast %124 : vector<1x128xf32> to vector<32x128xf32>
    %127 = arith.mulf %125, %126 : vector<32x128xf32>
    %128 = arith.addf %122, %127 : vector<32x128xf32>
    %129 = vector.extract_strided_slice %107 {offsets = [0, 3], sizes = [32, 1], strides = [1, 1]} : vector<32x4xf32> to vector<32x1xf32>
    %130 = vector.extract_strided_slice %0 {offsets = [3, 0], sizes = [1, 128], strides = [1, 1]} : vector<4x128xf32> to vector<1x128xf32>
    %131 = vector.broadcast %129 : vector<32x1xf32> to vector<32x128xf32>
    %132 = vector.broadcast %130 : vector<1x128xf32> to vector<32x128xf32>
    %133 = arith.mulf %131, %132 : vector<32x128xf32>
    %134 = arith.addf %128, %133 : vector<32x128xf32>
    %cst_28 = arith.constant 0.000000e+00 : f32
    %135 = vector.broadcast %cst_28 : f32 to vector<32x128xf32>
    %136 = arith.maximumf %134, %135 : vector<32x128xf32>
    %137 = vector.broadcast %109 : vector<32x1xf32> to vector<32x128xf32>
    %138 = arith.mulf %136, %137 : vector<32x128xf32>
    %cst_29 = arith.constant dense<0.000000e+00> : vector<128xf32>
    %139 = vector.multi_reduction <add>, %138, %cst_29 [0] : vector<32x128xf32> to vector<128xf32>
    %140 = vector.shape_cast %139 : vector<128xf32> to vector<1x128xf32>
    %141 = arith.addf %106, %140 : vector<1x128xf32>
    %c0_30 = arith.constant 0 : index
    %c0_31 = arith.constant 0 : index
    %142 = memref.load %arg5[%c0_30, %c0_31] : memref<1x1xf32, #tpu.memory_space<smem>>
    %143 = vector.broadcast %142 : f32 to vector<1x128xf32>
    %144 = arith.addf %141, %143 : vector<1x128xf32>
    %c0_32 = arith.constant 0 : index
    %c0_33 = arith.constant 0 : index
    %145 = vector.load %arg6[%c0_32, %c0_33] : memref<1x128xf32, #tpu.memory_space<vmem>>, vector<1x128xf32>
    tpu.vector_store %arg6[%c0_32, %c0_33], %144 {strides = array<i32>} : memref<1x128xf32, #tpu.memory_space<vmem>>, vector<1x128xf32>,
    return
  }
  func.func @transform_0(%arg0: i32) -> (i32, i32) {
    %c0_i32 = arith.constant 0 : i32
    %c0_i32_0 = arith.constant 0 : i32
    return %c0_i32, %arg0 : i32, i32
  }
  func.func @transform_1(%arg0: i32) -> (i32, i32) {
    %c0_i32 = arith.constant 0 : i32
    %c0_i32_0 = arith.constant 0 : i32
    %c0_i32_1 = arith.constant 0 : i32
    return %c0_i32, %c0_i32_0 : i32, i32
  }
  func.func @transform_2(%arg0: i32) -> (i32, i32) {
    %c0_i32 = arith.constant 0 : i32
    %c0_i32_0 = arith.constant 0 : i32
    %c0_i32_1 = arith.constant 0 : i32
    return %c0_i32, %c0_i32_0 : i32, i32
  }
  func.func @transform_3(%arg0: i32) -> (i32, i32) {
    %c0_i32 = arith.constant 0 : i32
    %c0_i32_0 = arith.constant 0 : i32
    %c0_i32_1 = arith.constant 0 : i32
    return %c0_i32, %c0_i32_0 : i32, i32
  }
  func.func @transform_4(%arg0: i32) -> (i32, i32) {
    %c0_i32 = arith.constant 0 : i32
    %c0_i32_0 = arith.constant 0 : i32
    %c0_i32_1 = arith.constant 0 : i32
    return %c0_i32, %c0_i32_0 : i32, i32
  }
  func.func @transform_5(%arg0: i32) -> (i32, i32) {
    %c0_i32 = arith.constant 0 : i32
    %c0_i32_0 = arith.constant 0 : i32
    return %c0_i32, %arg0 : i32, i32
  }
}

</mosaic_0001>

<bundles_post_ra>
// kernel: mlp_forward.1
= control target key start
LH: loop header
LB: loop body
LE: loop exit
PB: predicated region body
PF: predicated region fallthrough
CT: control target
= control target key end

     0   :  { %v757_v0 = vmov 0   ;;  %v758_v10 = vmov 1   ;;  %v759_v13 = vmov 2   ;;  %v760_v18 = vmov 3   ;;  %s1241_s1 = inlined_call_operand.vmem [shape: f32[128,4], index: 1, kind: input, shape index: {}]   ;;  %s1242_s2 = inlined_call_operand.vmem [shape: f32[128,1], index: 2, kind: input, shape index: {}]   ;;  %s1243_s3 = inlined_call_operand.vmem [shape: f32[128,1], index: 3, kind: input, shape index: {}]   ;;  %s1244_s0 = inlined_call_operand.vmem [shape: f32[4,128], index: 0, kind: input, shape index: {}]   ;;  %s1245_s4 = inlined_call_operand.<no memory space> [shape: f32[1,1], index: 4, kind: input, shape index: {}]   ;;  %s1246_s5 = inlined_call_operand.vmem [shape: f32[1,128], index: 5, kind: output, shape index: {}]  }
   0x1   :  { %731 = vset.pattern.permute.xlu1 %v757_v0  ;;  %730 = vset.pattern.permute.xlu0 %v757_v0  ;;  %v24_v1 = vld [vmem:[%s1241_s1 + $0x10] sm:$0xff]  ;;  %v799_v2 = vld [vmem:[%s1241_s1] sm:$0xff]  ;;  %v805_v3 = vld [vmem:[%s1241_s1 + $0x18] sm:$0xff]  ;;  %v54_v39 = vlaneseq }
   0x2   :  { %46 = vperm.xlu1 %731, %v24_v1   ;;  %36 = vperm.xlu0 %730, %v799_v2   ;;  %v810_v4 = vld [vmem:[%s1241_s1 + $0x8] sm:$0xff]  ;;  %v26_v6 = vld [vmem:[%s1242_s2] sm:$0xff]  ;;  %v29_v7 = vld [vmem:[%s1242_s2 + $0x18] sm:$0xff] }
   0x3   :  { %v27_v5 = vld [vmem:[%s1242_s2 + $0x8] sm:$0xff]  ;;  %v28_v8 = vld [vmem:[%s1242_s2 + $0x10] sm:$0xff]  ;;  %v834_v11 = vld [vmem:[%s1241_s1 + $0x20] sm:$0xff]  ;;  %v964_v40 = vshrl.u32 %v54_v39, 7 }
   0x4   :  { %v31_v9 = vld [vmem:[%s1243_s3 + $0x8] sm:$0xff]  ;;  %v840_v12 = vld [vmem:[%s1241_s1 + $0x30] sm:$0xff]  ;;  %v212_v14 = vld [vmem:[%s1242_s2 + $0x20] sm:$0xff] }
   0x5   :  { %v214_v15 = vld [vmem:[%s1242_s2 + $0x30] sm:$0xff]  ;;  %v217_v16 = vld [vmem:[%s1243_s3 + $0x28] sm:$0xff]  ;;  %v858_v17 = vld [vmem:[%s1241_s1 + $0x40] sm:$0xff]  ;;  %v56_v41 = vsub.s32 0, %v964_v40  ;;  %v104_v59 = vsub.s32 1, %v964_v40 }
   0x6   :  { %51 = vperm.xlu1 %731, %v805_v3   ;;  %41 = vperm.xlu0 %730, %v810_v4   ;;  %v866_v19 = vld [vmem:[%s1241_s1 + $0x50] sm:$0xff]  ;;  %v30_v20 = vld [vmem:[%s1243_s3] sm:$0xff]  ;;  %v33_v24 = vld [vmem:[%s1243_s3 + $0x18] sm:$0xff] }
   0x7   :  { %v382_v21 = vld [vmem:[%s1242_s2 + $0x40] sm:$0xff]  ;;  %v32_v22 = vld [vmem:[%s1243_s3 + $0x10] sm:$0xff]  ;;  %v387_v25 = vld [vmem:[%s1243_s3 + $0x48] sm:$0xff] }
   0x8   :  { %v384_v23 = vld [vmem:[%s1242_s2 + $0x50] sm:$0xff]  ;;  %v209_v26 = vld [vmem:[%s1241_s1 + $0x28] sm:$0xff]  ;;  %v894_v27 = vld [vmem:[%s1241_s1 + $0x60] sm:$0xff] }
   0x9   :  { %v900_v28 = vld [vmem:[%s1241_s1 + $0x38] sm:$0xff]  ;;  %v905_v29 = vld [vmem:[%s1241_s1 + $0x70] sm:$0xff]  ;;  %v213_v30 = vld [vmem:[%s1242_s2 + $0x28] sm:$0xff] }
   0xa   :  { %69 = vperm.xlu1 %731, %v27_v5   ;;  %64 = vperm.xlu0 %730, %v26_v6   ;;  %v553_v31 = vld [vmem:[%s1242_s2 + $0x68] sm:$0xff]  ;;  %v215_v32 = vld [vmem:[%s1242_s2 + $0x38] sm:$0xff]  ;;  %v216_v35 = vld [vmem:[%s1243_s3 + $0x20] sm:$0xff] }
   0xb   :  { %v932_v33 = vld [vmem:[%s1241_s1 + $0x58] sm:$0xff]  ;;  %v939_v34 = vld [vmem:[%s1241_s1 + $0x68] sm:$0xff]  ;;  %v218_v36 = vld [vmem:[%s1243_s3 + $0x30] sm:$0xff] }
   0xc   :  { %v957_v37 = vld [vmem:[%s1241_s1 + $0x48] sm:$0xff]  ;;  %v219_v38 = vld [vmem:[%s1243_s3 + $0x38] sm:$0xff]  ;;  %v972_v43 = vld [vmem:[%s1244_s0] sm:$0xf] }
   0xd   :  { %v383_v45 = vld [vmem:[%s1242_s2 + $0x48] sm:$0xff]  ;;  %v979_v46 = vrot.slane %v972_v43, %v56_v41  ;;  %v385_v50 = vld [vmem:[%s1242_s2 + $0x58] sm:$0xff]  ;;  %v1013_v62 = vrot.slane %v972_v43, %v104_v59 }
   0xe   :  { %79 = vperm.xlu1 %731, %v29_v7   ;;  %74 = vperm.xlu0 %730, %v28_v8   ;;  %v389_v41 = vld [vmem:[%s1243_s3 + $0x58] sm:$0xff] }
  0x12   :  { %732 = vset.pattern.permute.xlu1 %v758_v10  ;;  %181 = vperm.xlu0 %730, %v31_v9  }
  0x13   :  { %91 = vperm.xlu1 %732, %v810_v4  }
  0x16   :  { %222 = vperm.xlu0 %730, %v834_v11  }
  0x17   :  { %95 = vperm.xlu1 %732, %v24_v1  }
  0x1a   :  { %232 = vperm.xlu0 %730, %v840_v12  }
  0x1b   :  { %733 = vset.pattern.permute.xlu1 %v759_v13 }
  0x1c   :  { %115 = vperm.xlu1 %733, %v799_v2  }
  0x1e   :  { %246 = vperm.xlu0 %730, %v212_v14  }
  0x20   :  { %123 = vperm.xlu1 %733, %v24_v1  }
  0x22   :  { %256 = vperm.xlu0 %730, %v214_v15  }
  0x24   :  { %127 = vperm.xlu1 %733, %v805_v3  }
  0x26   :  { %351 = vperm.xlu0 %730, %v217_v16  }
  0x28   :  { %734 = vset.pattern.permute.xlu1 %v760_v18 }
  0x29   :  { %147 = vperm.xlu1 %734, %v810_v4  }
  0x2a   :  { %392 = vperm.xlu0 %730, %v858_v17  }
  0x2d   :  { %151 = vperm.xlu1 %734, %v24_v1   ;;  %v132_v1 = vsub.s32 2, %v964_v40 }
  0x2e   :  { %402 = vperm.xlu0 %730, %v866_v19  }
  0x2f   :  { %v1025_v8 = vrot.slane %v972_v43, %v132_v1 }
  0x31   :  { %735 = vset.pattern.permute.xlu1 %v757_v0 }
  0x32   :  { %176 = vperm.xlu1 %735, %v30_v20   ;;  %416 = vperm.xlu0 %730, %v382_v21  }
  0x36   :  { %186 = vperm.xlu1 %735, %v32_v22   ;;  %426 = vperm.xlu0 %730, %v384_v23   ;;  %v557_v22 = vld [vmem:[%s1243_s3 + $0x68] sm:$0xff] }
  0x3a   :  { %191 = vperm.xlu1 %735, %v33_v24   ;;  %521 = vperm.xlu0 %730, %v387_v25   ;;  %v160_v24 = vsub.s32 3, %v964_v40 }
  0x3e   :  { %227 = vperm.xlu1 %735, %v209_v26   ;;  %562 = vperm.xlu0 %730, %v894_v27  }
  0x42   :  { %237 = vperm.xlu1 %735, %v900_v28   ;;  %572 = vperm.xlu0 %730, %v905_v29  }
  0x46   :  { %251 = vperm.xlu1 %735, %v213_v30   ;;  %591 = vperm.xlu0 %730, %v553_v31   ;;  %v386_v30 = vld [vmem:[%s1243_s3 + $0x40] sm:$0xff] }
  0x4a   :  { %261 = vperm.xlu1 %735, %v215_v32   ;;  %744 = vset.pattern.permute.xlu0 %v758_v10 }
  0x4b   :  { %87 = vperm.xlu0 %744, %v799_v2  }
  0x4e   :  { %736 = vset.pattern.permute.xlu1 %v758_v10 }
  0x4f   :  { %273 = vperm.xlu1 %736, %v209_v26   ;;  %99 = vperm.xlu0 %744, %v805_v3  }
  0x53   :  { %277 = vperm.xlu1 %736, %v840_v12   ;;  %269 = vperm.xlu0 %744, %v834_v11  }
  0x57   :  { %737 = vset.pattern.permute.xlu1 %v759_v13  ;;  %281 = vperm.xlu0 %744, %v900_v28  }
  0x58   :  { %293 = vperm.xlu1 %737, %v834_v11  }
  0x5b   :  { %439 = vperm.xlu0 %744, %v858_v17  }
  0x5c   :  { %301 = vperm.xlu1 %737, %v840_v12  }
  0x5f   :  { %451 = vperm.xlu0 %744, %v932_v33  }
  0x60   :  { %305 = vperm.xlu1 %737, %v900_v28  }
  0x63   :  { %613 = vperm.xlu0 %744, %v939_v34  }
  0x64   :  { %738 = vset.pattern.permute.xlu1 %v760_v18 }
  0x65   :  { %321 = vperm.xlu1 %738, %v209_v26  }
  0x67   :  { %617 = vperm.xlu0 %744, %v905_v29  }
  0x69   :  { %325 = vperm.xlu1 %738, %v840_v12  }
  0x6b   :  { %747 = vset.pattern.permute.xlu0 %v759_v13 }
  0x6c   :  { %119 = vperm.xlu0 %747, %v810_v4  }
  0x6d   :  { %739 = vset.pattern.permute.xlu1 %v757_v0 }
  0x6e   :  { %346 = vperm.xlu1 %739, %v216_v35  }
  0x70   :  { %297 = vperm.xlu0 %747, %v209_v26  }
  0x72   :  { %356 = vperm.xlu1 %739, %v218_v36  }
  0x74   :  { %467 = vperm.xlu0 %747, %v957_v37  }
  0x76   :  { %361 = vperm.xlu1 %739, %v219_v38  }
  0x78   :  { %637 = vperm.xlu0 %747, %v939_v34  }
  0x7a   :  { %397 = vperm.xlu1 %739, %v957_v37  }
  0x7c   :  { %641 = vperm.xlu0 %747, %v905_v29  }
  0x7d   :  { %v47_v42 = vpop.permute.xlu1 %46  ;;  %v37_v44 = vpop.permute.xlu0 %36 }
  0x7e   :  { %407 = vperm.xlu1 %739, %v932_v33   ;;  %v58_v49 = vmul.f32 %v979_v46, %v37_v44 }
  0x80   :  { %751 = vset.pattern.permute.xlu0 %v760_v18 }
  0x81   :  { %v982_v47 = vpop.permute.xlu1 %51  ;;  %143 = vperm.xlu0 %751, %v799_v2   ;;  %v985_v48 = vpop.permute.xlu0 %41 }
  0x82   :  { %421 = vperm.xlu1 %739, %v383_v45  }
  0x85   :  { %v991_v51 = vpop.permute.xlu1 %69  ;;  %155 = vperm.xlu0 %751, %v805_v3   ;;  %v65_v52 = vpop.permute.xlu0 %64  ;;  %v60_v3 = vmul.f32 %v979_v46, %v47_v42 }
  0x86   :  { %v994_v53 = vadd.f32 %v65_v52, %v58_v49  ;;  %431 = vperm.xlu1 %739, %v385_v50  }
  0x89   :  { %v996_v54 = vpop.permute.xlu1 %79  ;;  %317 = vperm.xlu0 %751, %v834_v11   ;;  %v75_v55 = vpop.permute.xlu0 %74  ;;  %v1032_v11 = vld [vmem:[%s1241_s1 + $0x78] sm:$0xff] }
  0x8a   :  { %740 = vset.pattern.permute.xlu1 %v758_v10  ;;  %v84_v6 = vadd.f32 %v75_v55, %v60_v3  ;;  %v552_v55 = vld [vmem:[%s1242_s2 + $0x60] sm:$0xff] }
  0x8b   :  { %443 = vperm.xlu1 %740, %v957_v37  }
  0x8d   :  { %329 = vperm.xlu0 %751, %v900_v28   ;;  %v1002_v56 = vpop.permute.xlu0 %181  ;;  %v1054_v28 = vrot.slane %v972_v43, %v160_v24 }
  0x8e   :  { %v1004_v57 = vpop.permute.xlu1 %91 }
  0x8f   :  { %447 = vperm.xlu1 %740, %v866_v19  }
  0x91   :  { %v223_v58 = vpop.permute.xlu0 %222  ;;  %487 = vperm.xlu0 %751, %v858_v17  }
  0x92   :  { %v96_v60 = vpop.permute.xlu1 %95  ;;  %v240_v63 = vmul.f32 %v223_v58, %v979_v46 }
  0x93   :  { %741 = vset.pattern.permute.xlu1 %v759_v13  ;;  %v108_v4 = vmul.f32 %v1013_v62, %v96_v60 }
  0x94   :  { %463 = vperm.xlu1 %741, %v858_v17  }
  0x95   :  { %v233_v61 = vpop.permute.xlu0 %232  ;;  %499 = vperm.xlu0 %751, %v932_v33   ;;  %v112_v14 = vadd.f32 %v108_v4, %v84_v6  ;;  %v554_v6 = vld [vmem:[%s1242_s2 + $0x70] sm:$0xff] }
  0x96   :  { %v242_v7 = vmul.f32 %v233_v61, %v979_v46 }
  0x97   :  { %v1017_v2 = vpop.permute.xlu1 %115 }
  0x98   :  { %471 = vperm.xlu1 %741, %v866_v19  }
  0x99   :  { %v247_v5 = vpop.permute.xlu0 %246  ;;  %661 = vperm.xlu0 %751, %v939_v34  }
  0x9a   :  { %v1027_v9 = vadd.f32 %v247_v5, %v240_v63 }
  0x9b   :  { %v124_v12 = vpop.permute.xlu1 %123 }
  0x9c   :  { %v136_v15 = vmul.f32 %v1025_v8, %v124_v12  ;;  %475 = vperm.xlu1 %741, %v932_v33  }
  0x9d   :  { %v257_v16 = vpop.permute.xlu0 %256  ;;  %669 = vperm.xlu0 %751, %v1032_v11  }
  0x9e   :  { %v140_v17 = vadd.f32 %v136_v15, %v112_v14  ;;  %v1037_v20 = vadd.f32 %v257_v16, %v242_v7  ;;  %v61_v15 = vmul.f32 %v979_v46, %v982_v47 }
  0x9f   :  { %v1039_v21 = vpop.permute.xlu1 %127 }
  0xa0   :  { %742 = vset.pattern.permute.xlu1 %v760_v18  ;;  %v85_v24 = vadd.f32 %v996_v54, %v61_v15  ;;  %v555_v54 = vld [vmem:[%s1242_s2 + $0x78] sm:$0xff] }
  0xa1   :  { %491 = vperm.xlu1 %742, %v957_v37   ;;  %v1046_v23 = vpop.permute.xlu0 %351  ;;  %756 = vset.pattern.permute.xlu0 %v757_v0 }
  0xa2   :  { %691 = vperm.xlu0 %756, %v557_v22  }
  0xa4   :  { %v1050_v25 = vpop.permute.xlu1 %147 }
  0xa5   :  { %495 = vperm.xlu1 %742, %v866_v19   ;;  %v393_v26 = vpop.permute.xlu0 %392  ;;  %v388_v19 = vld [vmem:[%s1243_s3 + $0x50] sm:$0xff] }
  0xa6   :  { %v410_v35 = vmul.f32 %v393_v26, %v979_v46 }
  0xa8   :  { %v152_v31 = vpop.permute.xlu1 %151 }
  0xa9   :  { %v164_v32 = vmul.f32 %v1054_v28, %v152_v31  ;;  %743 = vset.pattern.permute.xlu1 %v757_v0  ;;  %v403_v33 = vpop.permute.xlu0 %402  ;;  %v137_v31 = vmul.f32 %v1025_v8, %v1039_v21 }
  0xaa   :  { %516 = vperm.xlu1 %743, %v386_v30   ;;  %v412_v39 = vmul.f32 %v403_v33, %v979_v46 }
  0xab   :  { %v168_v36 = vadd.f32 %v164_v32, %v140_v17 }
  0xad   :  { %v1065_v37 = vpop.permute.xlu1 %176  ;;  %v417_v38 = vpop.permute.xlu0 %416  ;;  %v172_v42 = vmax.f32 %v168_v36, 0.0 }
  0xae   :  { %526 = vperm.xlu1 %743, %v388_v19   ;;  %v1068_v40 = vadd.f32 %v417_v38, %v410_v35 }
  0xb1   :  { %v187_v43 = vpop.permute.xlu1 %186  ;;  %v427_v44 = vpop.permute.xlu0 %426 }
  0xb2   :  { %v1073_v45 = vmul.f32 %v187_v43, %v172_v42  ;;  %531 = vperm.xlu1 %743, %v389_v41   ;;  %v1075_v49 = vadd.f32 %v427_v44, %v412_v39 }
  0xb5   :  { %v1077_v50 = vpop.permute.xlu1 %191  ;;  %v1079_v52 = vpop.permute.xlu0 %521 }
  0xb6   :  { %567 = vperm.xlu1 %743, %v939_v34  }
  0xb9   :  { %v228_v58 = vpop.permute.xlu1 %227  ;;  %v1085_v59 = vpop.permute.xlu0 %562 }
  0xba   :  { %586 = vperm.xlu1 %743, %v552_v55   ;;  %v241_v63 = vmul.f32 %v228_v58, %v979_v46 }
  0xbd   :  { %v238_v60 = vpop.permute.xlu1 %237  ;;  %v1087_v61 = vpop.permute.xlu0 %572 }
  0xbe   :  { %745 = vset.pattern.permute.xlu1 %v758_v10  ;;  %v243_v4 = vmul.f32 %v238_v60, %v979_v46 }
  0xbf   :  { %609 = vperm.xlu1 %745, %v894_v27  }
  0xc1   :  { %v252_v1 = vpop.permute.xlu1 %251  ;;  %v1092_v3 = vpop.permute.xlu0 %591 }
  0xc2   :  { %v265_v34 = vadd.f32 %v252_v1, %v241_v63 }
  0xc3   :  { %746 = vset.pattern.permute.xlu1 %v757_v0 }
  0xc4   :  { %577 = vperm.xlu1 %746, %v1032_v11  }
  0xc5   :  { %v262_v5 = vpop.permute.xlu1 %261 }
  0xc6   :  { %v267_v7 = vadd.f32 %v262_v5, %v243_v4  ;;  %v88_v12 = vpop.permute.xlu0 %87 }
  0xc7   :  { %v106_v14 = vmul.f32 %v1013_v62, %v88_v12 }
  0xc8   :  { %596 = vperm.xlu1 %746, %v554_v6   ;;  %v59_v6 = vmul.f32 %v979_v46, %v985_v48  ;;  %v556_v48 = vld [vmem:[%s1243_s3 + $0x60] sm:$0xff] }
  0xc9   :  { %v1104_v16 = vadd.f32 %v106_v14, %v994_v53 }
  0xca   :  { %v274_v17 = vpop.permute.xlu1 %273  ;;  %v100_v22 = vpop.permute.xlu0 %99  ;;  %v83_v15 = vadd.f32 %v991_v51, %v59_v6 }
  0xcb   :  { %v285_v26 = vmul.f32 %v274_v17, %v1013_v62  ;;  %v109_v30 = vmul.f32 %v1013_v62, %v100_v22 }
  0xcc   :  { %748 = vset.pattern.permute.xlu1 %v759_v13 }
  0xcd   :  { %v289_v32 = vadd.f32 %v285_v26, %v265_v34  ;;  %v113_v33 = vadd.f32 %v109_v30, %v85_v24  ;;  %633 = vperm.xlu1 %748, %v894_v27  }
  0xce   :  { %v278_v47 = vpop.permute.xlu1 %277  ;;  %v270_v53 = vpop.permute.xlu0 %269 }
  0xcf   :  { %v286_v35 = vmul.f32 %v278_v47, %v1013_v62  ;;  %v1117_v36 = vadd.f32 %v137_v31, %v113_v33  ;;  %v284_v19 = vmul.f32 %v270_v53, %v1013_v62  ;;  %v558_v31 = vld [vmem:[%s1243_s3 + $0x70] sm:$0xff] }
  0xd1   :  { %v290_v38 = vadd.f32 %v286_v35, %v1037_v20  ;;  %749 = vset.pattern.permute.xlu1 %v757_v0  ;;  %v288_v41 = vadd.f32 %v284_v19, %v1027_v9 }
  0xd2   :  { %601 = vperm.xlu1 %749, %v555_v54   ;;  %v282_v21 = vpop.permute.xlu0 %281 }
  0xd3   :  { %v294_v39 = vpop.permute.xlu1 %293  ;;  %v287_v20 = vmul.f32 %v282_v21, %v1013_v62 }
  0xd4   :  { %v308_v42 = vmul.f32 %v294_v39, %v1025_v8 }
  0xd5   :  { %v291_v1 = vadd.f32 %v287_v20, %v267_v7  ;;  %v107_v7 = vmul.f32 %v1013_v62, %v1004_v57  ;;  %v163_v57 = vmul.f32 %v1054_v28, %v1050_v25 }
  0xd6   :  { %v1124_v43 = vadd.f32 %v308_v42, %v288_v41  ;;  %750 = vset.pattern.permute.xlu1 %v758_v10  ;;  %v1127_v44 = vpop.permute.xlu0 %439 }
  0xd7   :  { %621 = vperm.xlu1 %750, %v1032_v11   ;;  %v302_v55 = vpop.permute.xlu1 %301 }
  0xd8   :  { %v310_v58 = vmul.f32 %v302_v55, %v1025_v8 }
  0xda   :  { %v314_v60 = vadd.f32 %v310_v58, %v290_v38  ;;  %v1132_v63 = vpop.permute.xlu0 %451 }
  0xdb   :  { %752 = vset.pattern.permute.xlu1 %v760_v18  ;;  %v306_v9 = vpop.permute.xlu1 %305 }
  0xdc   :  { %v311_v34 = vmul.f32 %v306_v9, %v1025_v8  ;;  %657 = vperm.xlu1 %752, %v894_v27  }
  0xde   :  { %v1137_v10 = vadd.f32 %v311_v34, %v291_v1  ;;  %v1139_v4 = vpop.permute.xlu0 %613 }
  0xe0   :  { %753 = vset.pattern.permute.xlu1 %v759_v13  ;;  %v322_v5 = vpop.permute.xlu1 %321 }
  0xe1   :  { %645 = vperm.xlu1 %753, %v1032_v11   ;;  %v111_v11 = vadd.f32 %v107_v7, %v83_v15  ;;  %v333_v47 = vmul.f32 %v322_v5, %v1054_v28 }
  0xe2   :  { %v1145_v12 = vpop.permute.xlu0 %617 }
  0xe4   :  { %v326_v14 = vpop.permute.xlu1 %325 }
  0xe5   :  { %v334_v27 = vmul.f32 %v326_v14, %v1054_v28  ;;  %754 = vset.pattern.permute.xlu1 %v760_v18 }
  0xe6   :  { %665 = vperm.xlu1 %754, %v905_v29  }
  0xe7   :  { %v338_v13 = vadd.f32 %v334_v27, %v314_v60  ;;  %v120_v17 = vpop.permute.xlu0 %119 }
  0xe8   :  { %v135_v22 = vmul.f32 %v1025_v8, %v120_v17 }
  0xe9   :  { %v347_v24 = vpop.permute.xlu1 %346  ;;  %v342_v30 = vmax.f32 %v338_v13, 0.0 }
  0xea   :  { %v139_v26 = vadd.f32 %v135_v22, %v111_v11  ;;  %755 = vset.pattern.permute.xlu1 %v757_v0  ;;  %v559_v0 = vld [vmem:[%s1243_s3 + $0x78] sm:$0xff] }
  0xeb   :  { %686 = vperm.xlu1 %755, %v556_v48   ;;  %v298_v18 = vpop.permute.xlu0 %297 }
  0xec   :  { %v167_v51 = vadd.f32 %v163_v57, %v139_v26  ;;  %v309_v29 = vmul.f32 %v298_v18, %v1025_v8 }
  0xed   :  { %v357_v33 = vpop.permute.xlu1 %356 }
  0xee   :  { %v313_v53 = vadd.f32 %v309_v29, %v289_v32  ;;  %v366_v35 = vmul.f32 %v357_v33, %v342_v30  ;;  %v134_v32 = vmul.f32 %v1025_v8, %v1017_v2  ;;  %v171_v1 = vmax.f32 %v167_v51, 0.0 }
  0xef   :  { %696 = vperm.xlu1 %755, %v558_v31   ;;  %v1165_v25 = vpop.permute.xlu0 %467 }
  0xf0   :  { %v337_v54 = vadd.f32 %v333_v47, %v313_v53  ;;  %v138_v20 = vadd.f32 %v134_v32, %v1104_v16  ;;  %v195_v2 = vmul.f32 %v1002_v56, %v171_v1 }
  0xf1   :  { %v362_v19 = vpop.permute.xlu1 %361 }
  0xf2   :  { %v341_v57 = vmax.f32 %v337_v54, 0.0 }
  0xf3   :  { %701 = vperm.xlu1 %755, %v559_v0   ;;  %v1170_v38 = vpop.permute.xlu0 %637 }
  0xf4   :  { %v365_v47 = vmul.f32 %v1046_v23, %v341_v57 }
  0xf5   :  { %v398_v21 = vpop.permute.xlu1 %397 }
  0xf6   :  { %v411_v42 = vmul.f32 %v398_v21, %v979_v46 }
  0xf7   :  { %v1172_v39 = vpop.permute.xlu0 %641 }
  0xf9   :  { %v408_v41 = vpop.permute.xlu1 %407 }
  0xfa   :  { %v413_v5 = vmul.f32 %v408_v41, %v979_v46 }
  0xfc   :  { %v144_v55 = vpop.permute.xlu0 %143 }
  0xfd   :  { %v162_v58 = vmul.f32 %v1054_v28, %v144_v55  ;;  %v422_v60 = vpop.permute.xlu1 %421 }
  0xfe   :  { %v435_v9 = vadd.f32 %v422_v60, %v411_v42 }
  0xff   :  { %v166_v34 = vadd.f32 %v162_v58, %v138_v20 }
 0x100   :  { %v156_v6 = vpop.permute.xlu0 %155 }
 0x101   :  { %v170_v7 = vmax.f32 %v166_v34, 0.0  ;;  %v165_v14 = vmul.f32 %v1054_v28, %v156_v6  ;;  %v432_v27 = vpop.permute.xlu1 %431 }
 0x102   :  { %v437_v15 = vadd.f32 %v432_v27, %v413_v5  ;;  %v479_v27 = vmul.f32 %v1165_v25, %v1025_v8 }
 0x103   :  { %v194_v13 = vmul.f32 %v1065_v37, %v170_v7  ;;  %v169_v16 = vadd.f32 %v165_v14, %v1117_v36 }
 0x104   :  { %v318_v17 = vpop.permute.xlu0 %317 }
 0x105   :  { %v198_v11 = vadd.f32 %v195_v2, %v194_v13  ;;  %v173_v22 = vmax.f32 %v169_v16, 0.0  ;;  %v332_v48 = vmul.f32 %v318_v17, %v1054_v28 }
 0x106   :  { %v444_v26 = vpop.permute.xlu1 %443 }
 0x107   :  { %v197_v18 = vmul.f32 %v1077_v50, %v173_v22  ;;  %v199_v51 = vadd.f32 %v198_v11, %v1073_v45  ;;  %v336_v29 = vadd.f32 %v332_v48, %v1124_v43  ;;  %v455_v30 = vmul.f32 %v444_v26, %v1013_v62 }
 0x108   :  { %v330_v56 = vpop.permute.xlu0 %329  ;;  %v454_v45 = vmul.f32 %v1127_v44, %v1013_v62  ;;  %v457_v44 = vmul.f32 %v1132_v63, %v1013_v62 }
 0x109   :  { %v200_v31 = vadd.f32 %v199_v51, %v197_v18  ;;  %v340_v37 = vmax.f32 %v336_v29, 0.0  ;;  %v459_v33 = vadd.f32 %v455_v30, %v435_v9  ;;  %v335_v36 = vmul.f32 %v330_v56, %v1054_v28 }
 0x10a   :  { %v448_v53 = vpop.permute.xlu1 %447  ;;  %v458_v23 = vadd.f32 %v454_v45, %v1068_v40  ;;  %v461_v14 = vadd.f32 %v457_v44, %v437_v15 }
 0x10b   :  { %v201_v0 = vrot.slane %v200_v31, 4  ;;  %v364_v54 = vmul.f32 %v347_v24, %v340_v37  ;;  %v339_v21 = vadd.f32 %v335_v36, %v1137_v10  ;;  %v456_v50 = vmul.f32 %v448_v53, %v1013_v62 }
 0x10c   :  { %v488_v16 = vpop.permute.xlu0 %487  ;;  %v483_v26 = vadd.f32 %v479_v27, %v459_v33 }
 0x10d   :  { %v202_v43 = vadd.f32 %v201_v0, %v200_v31  ;;  %v368_v41 = vadd.f32 %v365_v47, %v364_v54  ;;  %v343_v32 = vmax.f32 %v339_v21, 0.0  ;;  %v460_v42 = vadd.f32 %v456_v50, %v1075_v49 }
 0x10e   :  { %v502_v63 = vmul.f32 %v488_v16, %v1054_v28  ;;  %v649_v16 = vmul.f32 %v1170_v38, %v1025_v8 }
 0x10f   :  { %v367_v55 = vmul.f32 %v362_v19, %v343_v32  ;;  %v369_v20 = vadd.f32 %v368_v41, %v366_v35  ;;  %v464_v58 = vpop.permute.xlu1 %463  ;;  %v203_v24 = vrot.slane %v202_v43, 2 }
 0x110   :  { %v478_v60 = vmul.f32 %v464_v58, %v1025_v8  ;;  %v500_v56 = vpop.permute.xlu0 %499 }
 0x111   :  { %v370_v9 = vadd.f32 %v369_v20, %v367_v55  ;;  %v204_v6 = vadd.f32 %v203_v24, %v202_v43  ;;  %v505_v37 = vmul.f32 %v500_v56, %v1054_v28 }
 0x112   :  { %v482_v10 = vadd.f32 %v478_v60, %v458_v23 }
 0x113   :  { %v371_v1 = vrot.slane %v370_v9, 4  ;;  %v472_v34 = vpop.permute.xlu1 %471  ;;  %v205_v2 = vrot.slane %v204_v6, 1 }
 0x114   :  { %v480_v5 = vmul.f32 %v472_v34, %v1025_v8  ;;  %v506_v29 = vadd.f32 %v502_v63, %v482_v10  ;;  %v662_v63 = vpop.permute.xlu0 %661 }
 0x115   :  { %v372_v7 = vadd.f32 %v371_v1, %v370_v9  ;;  %v206_v48 = vadd.f32 %v205_v2, %v204_v6  ;;  %v580_v2 = vmul.f32 %v1085_v59, %v979_v46  ;;  %v673_v59 = vmul.f32 %v662_v63, %v1054_v28 }
 0x116   :  { %v484_v49 = vadd.f32 %v480_v5, %v460_v42  ;;  %v510_v47 = vmax.f32 %v506_v29, 0.0 }
 0x117   :  { %v373_v19 = vrot.slane %v372_v7, 2  ;;  %v476_v35 = vpop.permute.xlu1 %475 }
 0x118   :  { %v481_v40 = vmul.f32 %v476_v35, %v1025_v8  ;;  %v670_v56 = vpop.permute.xlu0 %669 }
 0x119   :  { %v374_v13 = vadd.f32 %v373_v19, %v372_v7 }
 0x11a   :  { %v485_v17 = vadd.f32 %v481_v40, %v461_v14  ;;  %v625_v40 = vmul.f32 %v1139_v4, %v1013_v62  ;;  %v626_v4 = vmul.f32 %v1145_v12, %v1013_v62 }
 0x11b   :  { %v375_v11 = vrot.slane %v374_v13, 1 }
 0x11c   :  { %v492_v22 = vpop.permute.xlu1 %491  ;;  %v509_v21 = vadd.f32 %v505_v37, %v485_v17 }
 0x11d   :  { %v376_v57 = vadd.f32 %v375_v11, %v374_v13  ;;  %v503_v18 = vmul.f32 %v492_v22, %v1054_v28  ;;  %v582_v13 = vmul.f32 %v1087_v61, %v979_v46 }
 0x11e   :  { %v513_v32 = vmax.f32 %v509_v21, 0.0 }
 0x11f   :  { %v507_v51 = vadd.f32 %v503_v18, %v483_v26  ;;  %v377_v15 = vadd.f32 %v376_v57, %v206_v48 }
 0x120   :  { %v496_v30 = vpop.permute.xlu1 %495 }
 0x121   :  { %v504_v25 = vmul.f32 %v496_v30, %v1054_v28  ;;  %v511_v31 = vmax.f32 %v507_v51, 0.0  ;;  %v650_v30 = vmul.f32 %v1172_v39, %v1025_v8 }
 0x123   :  { %v508_v36 = vadd.f32 %v504_v25, %v484_v49  ;;  %v535_v54 = vmul.f32 %v1079_v52, %v511_v31 }
 0x125   :  { %v517_v53 = vpop.permute.xlu1 %516  ;;  %v512_v50 = vmax.f32 %v508_v36, 0.0 }
 0x126   :  { %v534_v0 = vmul.f32 %v517_v53, %v510_v47 }
 0x128   :  { %v538_v33 = vadd.f32 %v535_v54, %v534_v0 }
 0x129   :  { %v527_v45 = vpop.permute.xlu1 %526 }
 0x12a   :  { %v536_v43 = vmul.f32 %v527_v45, %v512_v50  ;;  %v692_v50 = vpop.permute.xlu0 %691  ;;  %v675_v45 = vmul.f32 %v670_v56, %v1054_v28 }
 0x12c   :  { %v539_v41 = vadd.f32 %v538_v33, %v536_v43 }
 0x12d   :  { %v532_v42 = vpop.permute.xlu1 %531 }
 0x12e   :  { %v537_v55 = vmul.f32 %v532_v42, %v513_v32 }
 0x130   :  { %v540_v20 = vadd.f32 %v539_v41, %v537_v55 }
 0x131   :  { %v568_v58 = vpop.permute.xlu1 %567 }
 0x132   :  { %v541_v23 = vrot.slane %v540_v20, 4  ;;  %v581_v19 = vmul.f32 %v568_v58, %v979_v46 }
 0x134   :  { %v542_v60 = vadd.f32 %v541_v23, %v540_v20  ;;  %v605_v14 = vadd.f32 %v1092_v3, %v581_v19 }
 0x135   :  { %v587_v24 = vpop.permute.xlu1 %586 }
 0x136   :  { %v543_v9 = vrot.slane %v542_v60, 2  ;;  %v629_v17 = vadd.f32 %v625_v40, %v605_v14  ;;  %v604_v22 = vadd.f32 %v587_v24, %v580_v2 }
 0x138   :  { %v544_v10 = vadd.f32 %v543_v9, %v542_v60  ;;  %v653_v26 = vadd.f32 %v649_v16, %v629_v17 }
 0x13a   :  { %v545_v1 = vrot.slane %v544_v10, 1  ;;  %v610_v34 = vpop.permute.xlu1 %609  ;;  %v677_v25 = vadd.f32 %v673_v59, %v653_v26 }
 0x13b   :  { %v624_v11 = vmul.f32 %v610_v34, %v1013_v62 }
 0x13c   :  { %v546_v44 = vadd.f32 %v545_v1, %v544_v10  ;;  %v681_v54 = vmax.f32 %v677_v25, 0.0 }
 0x13d   :  { %v628_v18 = vadd.f32 %v624_v11, %v604_v22 }
 0x13e   :  { %v1209_v52 = vadd.f32 %v546_v44, %v377_v15  ;;  %v705_v43 = vmul.f32 %v692_v50, %v681_v54 }
 0x13f   :  { %v578_v5 = vpop.permute.xlu1 %577 }
 0x140   :  { %v583_v38 = vmul.f32 %v578_v5, %v979_v46 }
 0x143   :  { %v597_v6 = vpop.permute.xlu1 %596 }
 0x144   :  { %v606_v48 = vadd.f32 %v597_v6, %v582_v13 }
 0x146   :  { %v630_v51 = vadd.f32 %v626_v4, %v606_v48 }
 0x148   :  { %v634_v7 = vpop.permute.xlu1 %633  ;;  %v654_v0 = vadd.f32 %v650_v30, %v630_v51 }
 0x149   :  { %v648_v3 = vmul.f32 %v634_v7, %v1025_v8 }
 0x14b   :  { %v652_v15 = vadd.f32 %v648_v3, %v628_v18 }
 0x14d   :  { %v602_v49 = vpop.permute.xlu1 %601 }
 0x14e   :  { %v607_v31 = vadd.f32 %v602_v49, %v583_v38 }
 0x152   :  { %v622_v35 = vpop.permute.xlu1 %621 }
 0x153   :  { %v627_v29 = vmul.f32 %v622_v35, %v1013_v62 }
 0x155   :  { %v631_v53 = vadd.f32 %v627_v29, %v607_v31 }
 0x157   :  { %v658_v27 = vpop.permute.xlu1 %657 }
 0x158   :  { %v672_v61 = vmul.f32 %v658_v27, %v1054_v28 }
 0x15a   :  { %v676_v12 = vadd.f32 %v672_v61, %v652_v15 }
 0x15c   :  { %v646_v57 = vpop.permute.xlu1 %645  ;;  %v680_v33 = vmax.f32 %v676_v12, 0.0 }
 0x15d   :  { %v651_v37 = vmul.f32 %v646_v57, %v1025_v8 }
 0x15f   :  { %v655_v46 = vadd.f32 %v651_v37, %v631_v53 }
 0x161   :  { %v666_v36 = vpop.permute.xlu1 %665  ;;  %v679_v32 = vadd.f32 %v675_v45, %v655_v46 }
 0x162   :  { %v674_v47 = vmul.f32 %v666_v36, %v1054_v28  ;;  %v719_v28 = vstv %s1245_s4 }
 0x163   :  { %v683_v58 = vmax.f32 %v679_v32, 0.0 }
 0x164   :  { %v678_v21 = vadd.f32 %v674_v47, %v654_v0 }
 0x166   :  { %v687_v62 = vpop.permute.xlu1 %686  ;;  %v682_v41 = vmax.f32 %v678_v21, 0.0 }
 0x167   :  { %v704_v39 = vmul.f32 %v687_v62, %v680_v33 }
 0x169   :  { %v708_v55 = vadd.f32 %v705_v43, %v704_v39 }
 0x16a   :  { %v697_v42 = vpop.permute.xlu1 %696 }
 0x16b   :  { %v706_v8 = vmul.f32 %v697_v42, %v682_v41 }
 0x16d   :  { %v709_v20 = vadd.f32 %v708_v55, %v706_v8 }
 0x16e   :  { %v702_v23 = vpop.permute.xlu1 %701 }
 0x16f   :  { %v707_v60 = vmul.f32 %v702_v23, %v683_v58 }
 0x171   :  { %v710_v24 = vadd.f32 %v709_v20, %v707_v60 }
 0x173   :  { %v711_v9 = vrot.slane %v710_v24, 4 }
 0x175   :  { %v712_v10 = vadd.f32 %v711_v9, %v710_v24 }
 0x177   :  { %v713_v1 = vrot.slane %v712_v10, 2 }
 0x179   :  { %v714_v34 = vadd.f32 %v713_v1, %v712_v10 }
 0x17b   :  { %v715_v44 = vrot.slane %v714_v34, 1 }
 0x17d   :  { %v716_v5 = vadd.f32 %v715_v44, %v714_v34 }
 0x17f   :  { %v717_v6 = vadd.f32 %v716_v5, %v1209_v52 }
 0x181   :  { %v720_v7 = vadd.f32 %v719_v28, %v717_v6 }
 0x183   :  { %721 = vst [vmem:[%s1246_s5] sm:$0x1] %v720_v7 }

</bundles_post_ra>
